<compile_context>
chip_gen: v5e
topology: v5e:2x2
jax: 0.10.0
libtpu: 0.0.40
codegen_flags: <defaults>
</compile_context>

<pallas_src>
import functools

import jax
import jax.numpy as jnp
from jax.experimental import pallas as pl
from jax.experimental.pallas import tpu as pltpu


# ---------------------------------------------------------------------------
# helpers
# ---------------------------------------------------------------------------

def _vmem_capacity_bytes():
    try:
        info = pltpu.get_tpu_info()
        cap = getattr(info, "vmem_capacity_bytes", None)
        if cap:
            return int(cap)
    except Exception:
        pass
    return 64 * 1024 * 1024  # conservative default (v7x per-TC VMEM)


def _pick_tile(total, cap, quantum):
    """Largest divisor of `total` that is a multiple of `quantum` and <= cap;
    falls back to the full extent (always a legal block dim)."""
    hi = min(cap, total)
    hi -= hi % quantum
    t = hi
    while t >= quantum:
        if total % t == 0:
            return t
        t -= quantum
    return total


def _shrink_tile(total, cur, quantum):
    if cur <= quantum:
        return cur
    t = _pick_tile(total, max(quantum, cur // 2), quantum)
    return t if t < cur else cur


# ---------------------------------------------------------------------------
# stage 1: fused QKV projection (1x1 convs) on NCHW row tiles
# ---------------------------------------------------------------------------

def _proj_kernel(x_ref, w_ref, b_ref, q_ref, k_ref, v_ref, *, C, Cq):
    # x_ref: (1, C, TR) f32 block of the NCHW input.
    x = x_ref[0].T.astype(w_ref.dtype)                              # (TR, C)
    proj = jnp.dot(x, w_ref[...], preferred_element_type=jnp.float32)
    proj = proj + b_ref[...]                                        # (TR, C+2Cq) f32
    v_ref[0] = proj[:, :C].astype(v_ref.dtype)
    q_ref[0] = proj[:, C:C + Cq].astype(q_ref.dtype)
    k_ref[0] = proj[:, C + Cq:C + 2 * Cq].astype(k_ref.dtype)


# ---------------------------------------------------------------------------
# stage 2: flash-style position attention (online softmax over kv tiles)
# ---------------------------------------------------------------------------

def _attn_kernel(q_ref, k_ref, v_ref, xr_ref, gamma_ref,
                 o_ref, m_sc, l_sc, acc_sc):
    ki = pl.program_id(2)
    nk = pl.num_programs(2)

    @pl.when(ki == 0)
    def _init():
        m_sc[...] = jnp.full(m_sc.shape, -jnp.inf, m_sc.dtype)
        l_sc[...] = jnp.zeros(l_sc.shape, l_sc.dtype)
        acc_sc[...] = jnp.zeros(acc_sc.shape, acc_sc.dtype)

    q = q_ref[0]                           # (TQ, Cq) compute dtype
    k = k_ref[0]                           # (TK, Cq) compute dtype
    v = v_ref[0]                           # (TK, C)  compute dtype

    # energy tile: Q @ K^T  (low-rank Cq contraction; transposed-RHS dot -> no
    # XLU transpose of the key tile)
    e = jax.lax.dot_general(
        q, k, dimension_numbers=(((1,), (1,)), ((), ())),
        preferred_element_type=jnp.float32)                 # (TQ, TK) f32

    m_prev = m_sc[...]
    m_new = jnp.maximum(m_prev, jnp.max(e, axis=-1, keepdims=True))
    alpha = jnp.exp(m_prev - m_new)
    p = jnp.exp(e - m_new)                                  # (TQ, TK) f32
    l_sc[...] = alpha * l_sc[...] + jnp.sum(p, axis=-1, keepdims=True)
    acc_sc[...] = alpha * acc_sc[...] + jnp.dot(
        p.astype(v.dtype), v, preferred_element_type=jnp.float32)   # (TQ, C)
    m_sc[...] = m_new

    @pl.when(ki == nk - 1)
    def _finalize():
        inv_l = pl.reciprocal(l_sc[...], approx=True)       # EUP, VALU-free
        gamma = gamma_ref[0]                                # SMEM scalar
        out_t = (gamma * (acc_sc[...] * inv_l)).T           # (C, TQ) f32, XLU
        o_ref[0] = (out_t + xr_ref[0]).astype(o_ref.dtype)  # residual add, NCHW store


# ---------------------------------------------------------------------------
# wrapper
# ---------------------------------------------------------------------------

def pam_module_pallas(x_nchw, wq, bq, wk, bk, wv, bv, gamma,
                      *, compute_dtype=jnp.bfloat16, q_tile=None, kv_tile=None):
    """x_nchw: (B, C, H, W).  Conv weights in torch layout (Cout, Cin, 1, 1);
    biases (Cout,); gamma scalar."""
    B, C, H, W = x_nchw.shape
    Cq = wq.shape[0]
    HW = H * W
    P = C + 2 * Cq

    comp = jnp.dtype(compute_dtype)
    gvb = comp.itemsize

    x_flat = x_nchw.reshape(B, C, HW).astype(jnp.float32)   # NCHW; free reshape

    # Conv weights (Cout, Cin, 1, 1) -> (Cin, Cout), fused as [Wv | Wq | Wk].
    wv_m = wv.reshape(C, C).T.astype(jnp.float32)
    wq_m = wq.reshape(Cq, C).T.astype(jnp.float32)
    wk_m = wk.reshape(Cq, C).T.astype(jnp.float32)
    w_all = jnp.concatenate([wv_m, wq_m, wk_m], axis=1).astype(comp)        # (C, P)
    b_all = jnp.concatenate([bv, bq, bk]).reshape(1, P).astype(jnp.float32)  # (1, P)
    gamma_arr = jnp.asarray(gamma, jnp.float32).reshape(1)

    cap = _vmem_capacity_bytes()
    # Per-TensorCore working-set budget: ~46 MiB when capacity reports 64 MiB
    # (v7x per-TC), ~92 MiB on v5e/v6e (128 MiB).
    budget = max(min(int(cap * 0.72), cap - 12 * 1024 * 1024), 24 * 1024 * 1024)

    # ---------------- stage 1: fused projection ---------------------------
    TR = _pick_tile(HW, 1024, 128)

    def proj_est(tr):
        return (2 * C * tr * 4              # x blocks (double buffered)
                + 2 * C * P * gvb + P * 4   # resident weights + bias
                + 2 * tr * P * gvb          # q/k/v output blocks
                + 2 * tr * C * 4            # transposed x temp
                + 2 * tr * P * 4)           # f32 proj temporaries

    for _ in range(8):
        if proj_est(TR) <= budget or TR <= 128:
            break
        nxt = _shrink_tile(HW, TR, 128)
        if nxt == TR:
            break
        TR = nxt

    proj_limit = int(min(cap * 0.9, max(2 * proj_est(TR), 32 * 1024 * 1024)))

    q_arr, k_arr, v_arr = pl.pallas_call(
        functools.partial(_proj_kernel, C=C, Cq=Cq),
        out_shape=(jax.ShapeDtypeStruct((B, HW, Cq), comp),
                   jax.ShapeDtypeStruct((B, HW, Cq), comp),
                   jax.ShapeDtypeStruct((B, HW, C), comp)),
        grid_spec=pltpu.PrefetchScalarGridSpec(
            num_scalar_prefetch=0,
            grid=(B, HW // TR),
            in_specs=[
                pl.BlockSpec((1, C, TR), lambda b, r: (b, 0, r)),   # x (NCHW)
                pl.BlockSpec((C, P), lambda b, r: (0, 0)),          # [Wv|Wq|Wk]
                pl.BlockSpec((1, P), lambda b, r: (0, 0)),          # [bv|bq|bk]
            ],
            out_specs=[
                pl.BlockSpec((1, TR, Cq), lambda b, r: (b, r, 0)),  # Q
                pl.BlockSpec((1, TR, Cq), lambda b, r: (b, r, 0)),  # K
                pl.BlockSpec((1, TR, C), lambda b, r: (b, r, 0)),   # V
            ],
        ),
        compiler_params=pltpu.CompilerParams(
            dimension_semantics=("parallel", "parallel"),
            vmem_limit_bytes=proj_limit),
        cost_estimate=pl.CostEstimate(
            flops=int(2 * B * HW * C * P),
            transcendentals=0,
            bytes_accessed=int(B * HW * C * 4 + C * P * gvb + B * HW * P * gvb)),
    )(x_flat, w_all, b_all)

    # ---------------- stage 2: attention ----------------------------------
    if q_tile is None:
        TQ = _pick_tile(HW, 2048, 128)      # lane dim of the NCHW output block
    else:
        TQ = int(q_tile)
        if HW % TQ != 0 or not (TQ % 128 == 0 or TQ == HW):
            raise ValueError("q_tile must divide H*W and be a multiple of 128 (or == H*W)")
    if kv_tile is None:
        TK = _pick_tile(HW, 1024, 128)
        if TK > 1024:                       # no 128-multiple divisor <= cap
            TK = _pick_tile(HW, 1024, 8)
    else:
        TK = int(kv_tile)
        if HW % TK != 0 or not (TK % 8 == 0 or TK == HW):
            raise ValueError("kv_tile must divide H*W and be a multiple of 8 (or == H*W)")

    # Keep both v7x TensorCores busy when the parallel grid extent collapses.
    if q_tile is None and B * (HW // TQ) < 2:
        smaller = _shrink_tile(HW, TQ, 128)
        if smaller < TQ:
            TQ = smaller

    def attn_est(tq, tk):
        return (2 * tq * Cq * gvb           # Q blocks
                + 2 * tk * Cq * gvb         # K blocks
                + 2 * tk * C * gvb          # V blocks
                + 2 * C * tq * 4            # residual x blocks (NCHW)
                + 2 * C * tq * 4            # output blocks (NCHW)
                + tq * C * 4 + 2 * tq * 4   # acc / m / l scratch
                + 3 * tq * tk * 4           # energy / p temporaries
                + tq * C * 4)               # p@v / transpose staging

    # Shrink until the working set fits the per-core budget.
    # TODO(synk): if HW has no 8/128-multiple divisor the tiles stay at the
    # full extent and cannot be shrunk; very large non-aligned HW may exceed
    # the VMEM budget.
    for _ in range(32):
        if attn_est(TQ, TK) <= budget:
            break
        new_tq, new_tk = TQ, TK
        if kv_tile is None and TK > 256:
            new_tk = _shrink_tile(HW, TK, 128 if TK % 128 == 0 else 8)
        elif q_tile is None and TQ > 256:
            new_tq = _shrink_tile(HW, TQ, 128)
        elif kv_tile is None and TK > 8:
            new_tk = _shrink_tile(HW, TK, 8)
        elif q_tile is None and TQ > 128:
            new_tq = _shrink_tile(HW, TQ, 128)
        if (new_tq, new_tk) == (TQ, TK):
            break
        TQ, TK = new_tq, new_tk

    nq, nk = HW // TQ, HW // TK
    attn_limit = int(min(cap * 0.9, max(2 * attn_est(TQ, TK), 32 * 1024 * 1024)))

    out_flat = pl.pallas_call(
        _attn_kernel,
        out_shape=jax.ShapeDtypeStruct((B, C, HW), jnp.float32),
        grid_spec=pltpu.PrefetchScalarGridSpec(
            num_scalar_prefetch=0,
            grid=(B, nq, nk),
            in_specs=[
                pl.BlockSpec((1, TQ, Cq), lambda b, qi, ki: (b, qi, 0)),  # Q
                pl.BlockSpec((1, TK, Cq), lambda b, qi, ki: (b, ki, 0)),  # K
                pl.BlockSpec((1, TK, C), lambda b, qi, ki: (b, ki, 0)),   # V
                pl.BlockSpec((1, C, TQ), lambda b, qi, ki: (b, 0, qi)),   # x residual (NCHW)
                pl.BlockSpec(memory_space=pltpu.MemorySpace.SMEM),        # gamma
            ],
            out_specs=pl.BlockSpec((1, C, TQ), lambda b, qi, ki: (b, 0, qi)),
            scratch_shapes=[
                pltpu.VMEM((TQ, 1), jnp.float32),   # running max
                pltpu.VMEM((TQ, 1), jnp.float32),   # running sum
                pltpu.VMEM((TQ, C), jnp.float32),   # output accumulator
            ],
        ),
        compiler_params=pltpu.CompilerParams(
            dimension_semantics=("parallel", "parallel", "arbitrary"),
            vmem_limit_bytes=attn_limit),
        cost_estimate=pl.CostEstimate(
            flops=int(2 * B * HW * HW * (Cq + C)),
            transcendentals=int(B * HW * HW),
            bytes_accessed=int(B * (nq * HW * (Cq + C) * gvb
                                    + HW * Cq * gvb + 2 * HW * C * 4))),
    )(q_arr, k_arr, v_arr, x_flat, gamma_arr)

    return out_flat.reshape(B, C, H, W).astype(x_nchw.dtype)


# ---------------------------------------------------------------------------
# pure-JAX reference (mirrors the PyTorch forward exactly, NCHW)
# ---------------------------------------------------------------------------

def pam_module_ref(x_nchw, wq, bq, wk, bk, wv, bv, gamma):
    B, C, H, W = x_nchw.shape
    HW = H * W

    def conv1x1(x, w, b):
        wm = w.reshape(w.shape[0], C)
        return jnp.einsum('bchw,oc->bohw', x, wm) + b[None, :, None, None]

    q = conv1x1(x_nchw, wq, bq).reshape(B, -1, HW).transpose(0, 2, 1)   # (B, HW, Cq)
    k = conv1x1(x_nchw, wk, bk).reshape(B, -1, HW)                      # (B, Cq, HW)
    energy = jnp.einsum('bic,bcj->bij', q, k)                           # (B, HW, HW)
    attn = jax.nn.softmax(energy, axis=-1)
    v = conv1x1(x_nchw, wv, bv).reshape(B, C, HW)                       # (B, C, HW)
    out = jnp.einsum('bcj,bij->bci', v, attn).reshape(B, C, H, W)
    return gamma * out + x_nchw


if __name__ == "__main__":
    key = jax.random.PRNGKey(0)
    B, C = 2, 16                     # in_dim = 16 -> query/key channels = 2
    Cq = C // 8
    k_x, k_wq, k_bq, k_wk, k_bk, k_wv, k_bv = jax.random.split(key, 7)

    wq = jax.random.normal(k_wq, (Cq, C, 1, 1), jnp.float32) * 0.1
    bq = jax.random.normal(k_bq, (Cq,), jnp.float32) * 0.1
    wk = jax.random.normal(k_wk, (Cq, C, 1, 1), jnp.float32) * 0.1
    bk = jax.random.normal(k_bk, (Cq,), jnp.float32) * 0.1
    wv = jax.random.normal(k_wv, (C, C, 1, 1), jnp.float32) * 0.1
    bv = jax.random.normal(k_bv, (C,), jnp.float32) * 0.1
    # nn.Parameter(torch.zeros(1)) -> gamma init is 0; use a nonzero value so
    # the attention path is actually exercised (semantics are identical).
    gamma = jnp.float32(0.5)

    # case 1: small image, single q/kv tile, f32 compute (tight numeric check)
    x1 = jax.random.normal(k_x, (B, C, 8, 8), jnp.float32)
    out1 = jax.block_until_ready(
        pam_module_pallas(x1, wq, bq, wk, bk, wv, bv, gamma,
                          compute_dtype=jnp.float32))
    ref1 = pam_module_ref(x1, wq, bq, wk, bk, wv, bv, gamma)
    assert out1.shape == x1.shape
    assert jnp.allclose(out1, ref1, atol=2e-3, rtol=2e-3), (
        float(jnp.max(jnp.abs(out1 - ref1))))

    # case 2: forced 128-tiles -> exercises the multi-tile online softmax,
    # default bf16 operand streams (fast MXU path on v5e/v6e/v7x)
    x2 = jax.random.normal(k_x, (B, C, 16, 16), jnp.float32)
    out2 = jax.block_until_ready(
        pam_module_pallas(x2, wq, bq, wk, bk, wv, bv, gamma,
                          q_tile=128, kv_tile=128))
    ref2 = pam_module_ref(x2, wq, bq, wk, bk, wv, bv, gamma)
    assert jnp.allclose(out2, ref2, atol=3e-2, rtol=3e-2), (
        float(jnp.max(jnp.abs(out2 - ref2))))

    # case 3: auto (budget-derived) tiles, default bf16
    out3 = jax.block_until_ready(
        pam_module_pallas(x2, wq, bq, wk, bk, wv, bv, gamma))
    assert jnp.allclose(out3, ref2, atol=3e-2, rtol=3e-2), (
        float(jnp.max(jnp.abs(out3 - ref2))))

    print("KERNEL_OK")
</pallas_src>

<mosaic_0001>
module attributes {stable_mosaic.version = 11 : i64} {
  func.func @_proj_kernel(%arg0: i32, %arg1: i32, %arg2: memref<1x16x64xf32, #tpu.memory_space<vmem>>, %arg3: memref<16x20xf32, #tpu.memory_space<vmem>>, %arg4: memref<1x20xf32, #tpu.memory_space<vmem>>, %arg5: memref<1x64x2xf32, #tpu.memory_space<vmem>>, %arg6: memref<1x64x2xf32, #tpu.memory_space<vmem>>, %arg7: memref<1x64x16xf32, #tpu.memory_space<vmem>>) attributes {dimension_semantics = [#tpu.dimension_semantics<parallel>, #tpu.dimension_semantics<parallel>], iteration_bounds = array<i64: 2, 1>, scalar_prefetch = 0 : i64, scratch_operands = 0 : i64, tpu.core_type = #tpu.core_type<tc>, window_params = [{transform_indices = @transform_0, window_bounds = array<i64: 1, 16, 64>}, {pipeline_mode = #tpu.pipeline_mode<synchronous>, transform_indices = @transform_1, window_bounds = array<i64: 16, 20>}, {pipeline_mode = #tpu.pipeline_mode<synchronous>, transform_indices = @transform_2, window_bounds = array<i64: 1, 20>}, {transform_indices = @transform_3, window_bounds = array<i64: 1, 64, 2>}, {transform_indices = @transform_4, window_bounds = array<i64: 1, 64, 2>}, {transform_indices = @transform_5, window_bounds = array<i64: 1, 64, 16>}]} {
    %c0 = arith.constant 0 : index
    %c0_0 = arith.constant 0 : index
    %c0_1 = arith.constant 0 : index
    %0 = vector.load %arg2[%c0, %c0_0, %c0_1] : memref<1x16x64xf32, #tpu.memory_space<vmem>>, vector<1x16x64xf32>
    %1 = vector.shape_cast %0 : vector<1x16x64xf32> to vector<16x64xf32>
    %2 = tpu.transpose %1, [1, 0] : vector<16x64xf32> -> vector<64x16xf32>
    %c0_2 = arith.constant 0 : index
    %c0_3 = arith.constant 0 : index
    %3 = vector.load %arg3[%c0_2, %c0_3] : memref<16x20xf32, #tpu.memory_space<vmem>>, vector<16x20xf32>
    %cst = arith.constant dense<0.000000e+00> : vector<64x20xf32>
    %4 = tpu.matmul %2, %3, %cst {dimension_numbers = #tpu.dot_dimension_numbers<[1], [0], [0], [1], [0, 0, 1, 1], [], []>} : vector<64x16xf32>, vector<16x20xf32>, vector<64x20xf32> -> vector<64x20xf32>
    %c0_4 = arith.constant 0 : index
    %c0_5 = arith.constant 0 : index
    %5 = vector.load %arg4[%c0_4, %c0_5] : memref<1x20xf32, #tpu.memory_space<vmem>>, vector<1x20xf32>
    %6 = vector.broadcast %5 : vector<1x20xf32> to vector<64x20xf32>
    %7 = arith.addf %4, %6 : vector<64x20xf32>
    %8 = vector.extract_strided_slice %7 {offsets = [0, 0], sizes = [64, 16], strides = [1, 1]} : vector<64x20xf32> to vector<64x16xf32>
    %c0_6 = arith.constant 0 : index
    %c0_7 = arith.constant 0 : index
    %c0_8 = arith.constant 0 : index
    %9 = vector.load %arg7[%c0_6, %c0_7, %c0_8] : memref<1x64x16xf32, #tpu.memory_space<vmem>>, vector<1x64x16xf32>
    %10 = vector.shape_cast %9 : vector<1x64x16xf32> to vector<64x16xf32>
    %11 = vector.shape_cast %8 : vector<64x16xf32> to vector<1x64x16xf32>
    tpu.vector_store %arg7[%c0_6, %c0_7, %c0_8], %11 {strides = array<i32>} : memref<1x64x16xf32, #tpu.memory_space<vmem>>, vector<1x64x16xf32>,
    %12 = vector.extract_strided_slice %7 {offsets = [0, 16], sizes = [64, 2], strides = [1, 1]} : vector<64x20xf32> to vector<64x2xf32>
    %c0_9 = arith.constant 0 : index
    %c0_10 = arith.constant 0 : index
    %c0_11 = arith.constant 0 : index
    %13 = vector.load %arg5[%c0_9, %c0_10, %c0_11] : memref<1x64x2xf32, #tpu.memory_space<vmem>>, vector<1x64x2xf32>
    %14 = vector.shape_cast %13 : vector<1x64x2xf32> to vector<64x2xf32>
    %15 = vector.shape_cast %12 : vector<64x2xf32> to vector<1x64x2xf32>
    tpu.vector_store %arg5[%c0_9, %c0_10, %c0_11], %15 {strides = array<i32>} : memref<1x64x2xf32, #tpu.memory_space<vmem>>, vector<1x64x2xf32>,
    %16 = vector.extract_strided_slice %7 {offsets = [0, 18], sizes = [64, 2], strides = [1, 1]} : vector<64x20xf32> to vector<64x2xf32>
    %c0_12 = arith.constant 0 : index
    %c0_13 = arith.constant 0 : index
    %c0_14 = arith.constant 0 : index
    %17 = vector.load %arg6[%c0_12, %c0_13, %c0_14] : memref<1x64x2xf32, #tpu.memory_space<vmem>>, vector<1x64x2xf32>
    %18 = vector.shape_cast %17 : vector<1x64x2xf32> to vector<64x2xf32>
    %19 = vector.shape_cast %16 : vector<64x2xf32> to vector<1x64x2xf32>
    tpu.vector_store %arg6[%c0_12, %c0_13, %c0_14], %19 {strides = array<i32>} : memref<1x64x2xf32, #tpu.memory_space<vmem>>, vector<1x64x2xf32>,
    return
  }
  func.func @transform_0(%arg0: i32, %arg1: i32) -> (i32, i32, i32) {
    %c0_i32 = arith.constant 0 : i32
    %c0_i32_0 = arith.constant 0 : i32
    return %arg0, %c0_i32, %arg1 : i32, i32, i32
  }
  func.func @transform_1(%arg0: i32, %arg1: i32) -> (i32, i32) {
    %c0_i32 = arith.constant 0 : i32
    %c0_i32_0 = arith.constant 0 : i32
    %c0_i32_1 = arith.constant 0 : i32
    return %c0_i32, %c0_i32_0 : i32, i32
  }
  func.func @transform_2(%arg0: i32, %arg1: i32) -> (i32, i32) {
    %c0_i32 = arith.constant 0 : i32
    %c0_i32_0 = arith.constant 0 : i32
    %c0_i32_1 = arith.constant 0 : i32
    return %c0_i32, %c0_i32_0 : i32, i32
  }
  func.func @transform_3(%arg0: i32, %arg1: i32) -> (i32, i32, i32) {
    %c0_i32 = arith.constant 0 : i32
    %c0_i32_0 = arith.constant 0 : i32
    return %arg0, %arg1, %c0_i32 : i32, i32, i32
  }
  func.func @transform_4(%arg0: i32, %arg1: i32) -> (i32, i32, i32) {
    %c0_i32 = arith.constant 0 : i32
    %c0_i32_0 = arith.constant 0 : i32
    return %arg0, %arg1, %c0_i32 : i32, i32, i32
  }
  func.func @transform_5(%arg0: i32, %arg1: i32) -> (i32, i32, i32) {
    %c0_i32 = arith.constant 0 : i32
    %c0_i32_0 = arith.constant 0 : i32
    return %arg0, %arg1, %c0_i32 : i32, i32, i32
  }
}

</mosaic_0001>

<bundles_post_ra>
// kernel: tpu_custom_call.1
= control target key start
LH: loop header
LB: loop body
LE: loop exit
PB: predicated region body
PF: predicated region fallthrough
CT: control target
= control target key end

     0   :  { %s1173_s0 = inlined_call_operand.hbm [shape: f32[2,16,64], index: 0, kind: input, shape index: {}]   ;;  %s1174_s1 = inlined_call_operand.hbm [shape: f32[16,20], index: 1, kind: input, shape index: {}]   ;;  %s1175_s2 = inlined_call_operand.vmem [shape: f32[1,20], index: 2, kind: input, shape index: {}]   ;;  %s1176_s3 = inlined_call_operand.vmem [shape: f32[2,64,2], index: 3, kind: output, shape index: {0}]   ;;  %s1177_s4 = inlined_call_operand.vmem [shape: f32[2,64,2], index: 4, kind: output, shape index: {1}]   ;;  %s1178_s5 = inlined_call_operand.vmem [shape: f32[2,64,16], index: 5, kind: output, shape index: {2}]  }
   0x1   :  { %1180 = sst [smem:[#allocation9_spill]] %s1174_s1 }
   0x2   :  { %11 = vsyncpa [#allocation3], 0 }
   0x3   :  { %13 = vsyncpa [#allocation3 + $0x1], 0 }
   0x4   :  { %14 = vsyncpa [#allocation5], 0  ;;  %s988_s18 = smov 0   ;;  %s990_s19 = smov 0  }
   0x5   :  { %s992_s20 = smov 0   ;;  %s994_s21 = smov 0  }
   0x6   :  { %s996_s22 = smov 0   ;;  %s998_s23 = smov 0  }
   0x7 LB: > { %s728_s24 = sadd.s32 4294967295, %s951_s23   ;;  %p54_p0 = scmp.ne.s32.totalorder %s935_s19, %s931_s18  ;;  %s951_s23 = sphi %s998_s23, %s20_s23   ;;  %s947_s22 = sphi %s996_s22, %s1192_s22   ;;  %s943_s21 = sphi %s994_s21, %s1191_s21   ;;  %s939_s20 = sphi %s992_s20, %s1190_s20   ;;  %s935_s19 = sphi %s990_s19, %s1189_s19   ;;  %s931_s18 = sphi %s988_s18, %s1188_s18  }
   0x8   : > { %p1018_p1 = scmp.eq.s32.totalorder %s728_s24, 0  ;;  %p730_p2 = scmp.ge.s32.totalorder %s951_s23, 1 }
   0x9   : > { %p191_p3 = scmp.lt.s32.totalorder %s951_s23, 3  ;;  %s1183_s1 = sld [smem:[#allocation9_spill]] }
   0xa   : > { %p1026_p4 = por %p1018_p1, %p54_p0  ;;  %s953_s6 = smov [#allocation4]  }
   0xb   : > { %p1033_p5 = pnand %p730_p2, %p191_p3  ;;  %s204_s7 = sshll.u32 %s953_s6, 4  ;;  %s205_s7 = int_to_ptr.vmem [resolvable:$true] %s204_s7 }
   0xc   : > { %s954_s8 = smov 128   ;;  %s955_s9 = smov 8  }
   0xd   : > { %p771_p6 = pneg %p1033_p5  ;;  %s32_s10 = sadd.s32 1, %s947_s22 }
   0xe   : > { %p34_p8 = scmp.ge.s32.totalorder %s32_s10, 2  ;;  %p48_p9 = scmp.ne.s32.totalorder %s939_s20, %s935_s19 }
   0xf   : > { %s202_s29 = sshll.u32 %s1183_s1, 4  ;;  %p772_p7 = pnand %p771_p6, %p1018_p1  ;;  %s203_s29 = int_to_ptr.hbm [resolvable:$true] %s202_s29 }
  0x10   : > { %p49_p10 = scmp.eq.s32.totalorder %s951_s23, 0  ;;  %s1194_s10 = smov (%p34_p8, %s32_s10), 0 }
  0x11   : > { %774 = dma.hbm_to_vmem [thread:$0]  (!%p772_p7), %s203_s29, 256, %s205_s7, [#allocation5], %s954_s8, %s954_s8, %s955_s9  }
  0x12   : > { %1185 = sst [smem:[#allocation8_spill]] %s1194_s10  ;;  %s41_s11 = sadd.s32 1, %s939_s20 }
  0x13   : > { %p1048_p11 = por %p49_p10, %p48_p9  ;;  %s36_s13 = ssub.s32 %s947_s22, %s1194_s10 }
  0x14   : > { %s221_s14 = sand.u32 1, %s939_s20   ;;  %p39_p12 = scmp.eq.s32.totalorder %s36_s13, 0 }
  0x15   : > { %p780_p13 = scmp.lt.s32.totalorder %s951_s23, 2  ;;  %s733_s15 = sshll.u32 %s221_s14, 4 }
  0x16   : > { %s755_s16 = sshll.u32 %s947_s22, 4  ;;  %s225_s29 = scalar_lea.vmem [#allocation2], %s733_s15 }
  0x17   : > { %s1058_s17 = scalar_select %p39_p12, %s939_s20, %s41_s11  }
  0x18   : > { %s231_s27 = scalar_lea.hbm %s1173_s0, %s755_s16  ;;  %s234_s6 = sshll.u32 %s225_s29, 4  ;;  %s235_s6 = int_to_ptr.vmem [resolvable:$true] %s234_s6 }
  0x19   : > { %s232_s28 = sshll.u32 %s231_s27, 4  ;;  %p776_p0 = pnand %p780_p13, %p1048_p11  ;;  %s233_s28 = int_to_ptr.hbm [resolvable:$true] %s232_s28 }
  0x1a   : > { %s222_s7 = scalar_lea.sflag [#allocation3], %s221_s14  ;;  %246 = sbr.rel (%p1033_p5) target bundleno = 514 (0x202), region = 32 }
  0x1b   : > { %778 = dma.hbm_to_vmem [thread:$0]  (!%p776_p0), %s233_s28, 256, %s235_s6, %s222_s7, %s954_s8, %s954_s8, %s955_s9  }
  0x1c   : > { %s248_s11 = sand.u32 (!%p1033_p5), 1, %s935_s19  }
  0x1d   : > { %s737_s13 = sshll.u32 (!%p1033_p5), %s248_s11, 4  ;;  %s249_s1 = scalar_lea.sflag (!%p1033_p5), [#allocation3], %s248_s11 }
  0x1e   : > { %s252_s10 = scalar_lea.vmem (!%p1033_p5), [#allocation2], %s737_s13 }
  0x1f   : > { %922 = dma.done.wait (%p1026_p4), %s249_s1, 256  }
  0x20   : > { %924 = vsyncadd (%p1026_p4), %s249_s1, 4294967040 }
  0x21   : > { %926 = dma.done.wait (%p1018_p1), [#allocation5], 256  }
  0x22   : > { %928 = vsyncadd (%p1018_p1), [#allocation5], 4294967040  ;;  %v337_v0 = vld [vmem:[%s252_s10] sm:$0xff]  ;;  %v372_v1 = vld [vmem:[#allocation4 + $0x8] sm:$0xff]  ;;  %vm377_vm0 = vcmask 130048   ;;  %p308_p1 = scmp.lt.s32.totalorder %s943_s21, 1 }
  0x23   : > { %339 = vxpose.xlu0.b32.start [1/2] (short) (narrow) %v337_v0, 64  ;;  %416 = vmatpush.msra.mxu0 %v372_v1  ;;  %v371_v2 = vld [vmem:[#allocation4] sm:$0xff]  ;;  %v338_v3 = vld [vmem:[%s252_s10 + $0x8] sm:$0xff]  ;;  %s957_s10 = smov 110   ;;  %vm483_vm1 = vcmask 15360  }
  0x24   : > { %759 = vmatpush.msra.mxu1 %v372_v1  ;;  %760 = vmatpush.msra.mxu2 %v372_v1  ;;  %s1196_s21 = smov (!%p308_p1, %s943_s21), 1  ;;  %v836_v12 = vld [vmem:[%s1175_s2] ss:$0 sm:$0xff] }
  0x25   : > { %417 = vmatpush.msra.mxu0 %v371_v2  ;;  %761 = vmatpush.msra.mxu3 %v372_v1  ;;  %s1086_s1 = sshll.u32 %s1196_s21, 6  ;;  %s956_s21 = smov 112  }
  0x26   : > { %762 = vmatpush.msra.mxu1 %v371_v2  ;;  %763 = vmatpush.msra.mxu2 %v371_v2  ;;  %s1095_s9 = scalar_lea.vmem %s1178_s5, %s1086_s1  ;;  %s1125_s15 = scalar_lea.vmem %s1176_s3, %s1086_s1 }
  0x27   : > { %764 = vmatpush.msra.mxu3 %v371_v2  ;;  %s325_s24 = scalar_lea.vmem %s1177_s4, %s1086_s1 }
  0x2b   : > { %340 = vxpose.xlu0.b32.end [2/2] (short) (narrow) %v338_v3, 64 }
  0xc7   : > { %v355_v4 = vpop.trf.xlu0 }
  0xc8   : > { %745 = vmatmul.msk.f32.vlgmr.msra.gmra.mxu0 %vm377_vm0, %v355_v4 }
  0xcf   : > { %v356_v5 = vpop.trf.xlu0 }
  0xd0   : > { %746 = vmatmul.msk.f32.gmra.mxu0 %vm377_vm0, %v356_v5 }
  0xd7   : > { %v357_v6 = vpop.trf.xlu0 }
  0xd8   : > { %747 = vmatmul.msk.f32.vlgmr.msra.gmra.mxu1 %vm377_vm0, %v357_v6 }
  0xdf   : > { %v358_v7 = vpop.trf.xlu0 }
  0xe0   : > { %748 = vmatmul.msk.f32.gmra.mxu1 %vm377_vm0, %v358_v7 }
  0xe7   : > { %v359_v8 = vpop.trf.xlu0 }
  0xe8   : > { %749 = vmatmul.msk.f32.vlgmr.msra.gmra.mxu2 %vm377_vm0, %v359_v8 }
  0xef   : > { %v360_v9 = vpop.trf.xlu0 }
  0xf0   : > { %750 = vmatmul.msk.f32.gmra.mxu2 %vm377_vm0, %v360_v9 }
  0xf7   : > { %v361_v10 = vpop.trf.xlu0 }
  0xf8   : > { %751 = vmatmul.msk.f32.vlgmr.msra.gmra.mxu3 %vm377_vm0, %v361_v10 }
  0xff   : > { %v362_v11 = vpop.trf.xlu0 }
 0x100   : > { %752 = vmatmul.msk.f32.gmra.mxu3 %vm377_vm0, %v362_v11 }
 0x145   : > { %v419_v13 = vpop.f32.mrf.mxu0 }
 0x146   : > { %v420_v14 = vadd.f32 %v836_v12, %v419_v13 }
 0x148   : > { %443 = vst.msk [vmem:[%s1095_s9] sm:$0xff] %vm377_vm0, %v420_v14  ;;  %459 = vrot.lane.b32.xlu1 %v420_v14, %s956_s21 }
 0x14d   : > { %v422_v15 = vpop.f32.mrf.mxu0 }
 0x14e   : > { %v423_v16 = vadd.f32 %v836_v12, %v422_v15 }
 0x150   : > { %444 = vst.msk [vmem:[%s1095_s9 + $0x8] sm:$0xff] %vm377_vm0, %v423_v16  ;;  %461 = vrot.lane.b32.xlu1 %v423_v16, %s956_s21 }
 0x155   : > { %v425_v17 = vpop.f32.mrf.mxu1 }
 0x156   : > { %v426_v18 = vadd.f32 %v836_v12, %v425_v17 }
 0x158   : > { %445 = vst.msk [vmem:[%s1095_s9 + $0x10] sm:$0xff] %vm377_vm0, %v426_v18  ;;  %494 = vrot.lane.b32.xlu1 %v423_v16, %s957_s10  ;;  %463 = vrot.lane.b32.xlu2 %v426_v18, %s956_s21 }
 0x15d   : > { %v428_v19 = vpop.f32.mrf.mxu1 }
 0x15e   : > { %v429_v20 = vadd.f32 %v836_v12, %v428_v19 }
 0x160   : > { %446 = vst.msk [vmem:[%s1095_s9 + $0x18] sm:$0xff] %vm377_vm0, %v429_v20  ;;  %498 = vrot.lane.b32.xlu1 %v429_v20, %s957_s10  ;;  %465 = vrot.lane.b32.xlu2 %v429_v20, %s956_s21 }
 0x168   : > { %492 = vrot.lane.b32.xlu2 %v420_v14, %s957_s10 }
 0x16b   : > { %v431_v21 = vpop.f32.mrf.mxu2 }
 0x16c   : > { %v432_v22 = vadd.f32 %v836_v12, %v431_v21 }
 0x16e   : > { %447 = vst.msk [vmem:[%s1095_s9 + $0x20] sm:$0xff] %vm377_vm0, %v432_v22  ;;  %467 = vrot.lane.b32.xlu0 %v432_v22, %s956_s21 }
 0x170   : > { %496 = vrot.lane.b32.xlu2 %v426_v18, %s957_s10 }
 0x173   : > { %v434_v23 = vpop.f32.mrf.mxu2 }
 0x174   : > { %v435_v24 = vadd.f32 %v836_v12, %v434_v23 }
 0x176   : > { %448 = vst.msk [vmem:[%s1095_s9 + $0x28] sm:$0xff] %vm377_vm0, %v435_v24  ;;  %469 = vrot.lane.b32.xlu1 %v435_v24, %s956_s21 }
 0x178   : > { %500 = vrot.lane.b32.xlu2 %v432_v22, %s957_s10 }
 0x17b   : > { %v437_v25 = vpop.f32.mrf.mxu3 }
 0x17c   : > { %v438_v26 = vadd.f32 %v836_v12, %v437_v25 }
 0x17e   : > { %449 = vst.msk [vmem:[%s1095_s9 + $0x30] sm:$0xff] %vm377_vm0, %v438_v26  ;;  %502 = vrot.lane.b32.xlu1 %v435_v24, %s957_s10 }
 0x180   : > { %471 = vrot.lane.b32.xlu2 %v438_v26, %s956_s21 }
 0x183   : > { %v440_v27 = vpop.f32.mrf.mxu3 }
 0x184   : > { %v441_v28 = vadd.f32 %v836_v12, %v440_v27 }
 0x186   : > { %450 = vst.msk [vmem:[%s1095_s9 + $0x38] sm:$0xff] %vm377_vm0, %v441_v28  ;;  %473 = vrot.lane.b32.xlu1 %v441_v28, %s956_s21 }
 0x188   : > { %504 = vrot.lane.b32.xlu2 %v438_v26, %s957_s10 }
 0x18e   : > { %506 = vrot.lane.b32.xlu1 %v441_v28, %s957_s10 }
 0x1b2   : > { %v464_v29 = vpop.permute.xlu2 %463 }
 0x1b3   : > { %486 = vst.msk [vmem:[%s1125_s15 + $0x10] sm:$0xff] %vm483_vm1, %v464_v29 }
 0x1ba   : > { %v460_v30 = vpop.permute.xlu1 %459  ;;  %v466_v31 = vpop.permute.xlu2 %465 }
 0x1bb   : > { %484 = vst.msk [vmem:[%s1125_s15] sm:$0xff] %vm483_vm1, %v460_v30 }
 0x1bc   : > { %487 = vst.msk [vmem:[%s1125_s15 + $0x18] sm:$0xff] %vm483_vm1, %v466_v31 }
 0x1c2   : > { %v462_v32 = vpop.permute.xlu1 %461  ;;  %v493_v33 = vpop.permute.xlu2 %492 }
 0x1c3   : > { %485 = vst.msk [vmem:[%s1125_s15 + $0x8] sm:$0xff] %vm483_vm1, %v462_v32 }
 0x1c4   : > { %516 = vst.msk [vmem:[%s325_s24] sm:$0xff] %vm483_vm1, %v493_v33 }
 0x1ca   : > { %v495_v34 = vpop.permute.xlu1 %494  ;;  %v497_v35 = vpop.permute.xlu2 %496 }
 0x1cb   : > { %517 = vst.msk [vmem:[%s325_s24 + $0x8] sm:$0xff] %vm483_vm1, %v495_v34 }
 0x1cc   : > { %518 = vst.msk [vmem:[%s325_s24 + $0x10] sm:$0xff] %vm483_vm1, %v497_v35 }
 0x1d2   : > { %v499_v36 = vpop.permute.xlu1 %498  ;;  %v501_v37 = vpop.permute.xlu2 %500 }
 0x1d3   : > { %519 = vst.msk [vmem:[%s325_s24 + $0x18] sm:$0xff] %vm483_vm1, %v499_v36 }
 0x1d4   : > { %520 = vst.msk [vmem:[%s325_s24 + $0x20] sm:$0xff] %vm483_vm1, %v501_v37 }
 0x1da   : > { %v472_v38 = vpop.permute.xlu2 %471 }
 0x1db   : > { %490 = vst.msk [vmem:[%s1125_s15 + $0x30] sm:$0xff] %vm483_vm1, %v472_v38 }
 0x1e0   : > { %v468_v39 = vpop.permute.xlu0 %467 }
 0x1e1   : > { %488 = vst.msk [vmem:[%s1125_s15 + $0x20] sm:$0xff] %vm483_vm1, %v468_v39 }
 0x1e2   : > { %v505_v40 = vpop.permute.xlu2 %504 }
 0x1e3   : > { %522 = vst.msk [vmem:[%s325_s24 + $0x30] sm:$0xff] %vm483_vm1, %v505_v40 }
 0x1e8   : > { %v470_v41 = vpop.permute.xlu1 %469 }
 0x1e9   : > { %489 = vst.msk [vmem:[%s1125_s15 + $0x28] sm:$0xff] %vm483_vm1, %v470_v41 }
 0x1f0   : > { %v503_v42 = vpop.permute.xlu1 %502 }
 0x1f1   : > { %521 = vst.msk [vmem:[%s325_s24 + $0x28] sm:$0xff] %vm483_vm1, %v503_v42 }
 0x1f8   : > { %v474_v43 = vpop.permute.xlu1 %473 }
 0x1f9   : > { %491 = vst.msk [vmem:[%s1125_s15 + $0x38] sm:$0xff] %vm483_vm1, %v474_v43 }
 0x200   : > { %v507_v44 = vpop.permute.xlu1 %506 }
 0x201   : > { %523 = vst.msk [vmem:[%s325_s24 + $0x38] sm:$0xff] %vm483_vm1, %v507_v44 }
 0x202 PF: > { %s20_s23 = sadd.s32 1, %s951_s23   ;;  %s1187_s27 = sld [smem:[#allocation8_spill]] }
 0x203   : > { %p17_p2 = scmp.ge.s32.totalorder %s20_s23, 4   ;;  %s1188_s18 = smov %s935_s19 }
 0x204   : > { %s1189_s19 = smov %s939_s20  ;;  %s1190_s20 = smov %s1058_s17 }
 0x205   : > { %s1191_s21 = smov %s947_s22  ;;  %19 = sbr.rel (!%p17_p2) target bundleno = 7 (0x7), region = 100 }
 0x208   : > { %s1192_s22 = smov %s1187_s27 }
 0x20a   :  { %604 = vsyncpa [#allocation3], 1 }
 0x20b   :  { %606 = vsyncpa [#allocation3 + $0x1], 1 }
 0x20c   :  { %607 = vsyncpa [#allocation5], 1 }

</bundles_post_ra>
